<compile_context>
chip_gen: v5e
topology: v5e:2x2
jax: 0.10.0
libtpu: 0.0.40
codegen_flags: <defaults>
</compile_context>

<pallas_src>
import functools

import jax
import jax.numpy as jnp
import numpy as np
from jax.experimental import pallas as pl
from jax.experimental.pallas import tpu as pltpu


def _round_up(a, b):
    return (a + b - 1) // b * b


def _largest_divisor_leq(n, cap):
    """Largest divisor of n that is <= cap (n >= 1, cap >= 1)."""
    best = 1
    for d in range(1, cap + 1):
        if n % d == 0:
            best = d
    return best


def _gemm_bias_kernel(p_ref, w_ref, b_ref, o_ref, acc_ref):
    # p_ref: (TM, TK) bf16   w_ref: (TK, TN) bf16   b_ref: (1, TN) f32
    # o_ref: (TM, TN) out    acc_ref: (TM, TN) f32
    @pl.when(pl.program_id(2) == 0)
    def _():
        acc_ref[...] = jnp.zeros_like(acc_ref)

    acc_ref[...] += jnp.dot(p_ref[...], w_ref[...],
                            preferred_element_type=jnp.float32)

    @pl.when(pl.program_id(2) == pl.num_programs(2) - 1)
    def _():
        o_ref[...] = (acc_ref[...] + b_ref[...]).astype(o_ref.dtype)


def _gemm_bias(patches, w2, b2, out_dtype, tm, tn, tk):
    Mp, Kp = patches.shape
    _, Np = w2.shape
    grid = (Mp // tm, Np // tn, Kp // tk)

    # Triple-buffer the big streaming operand only when the K loop is long
    # enough to benefit; otherwise keep the default double-buffering.
    if grid[2] >= 3:
        patches_spec = pl.BlockSpec((tm, tk), lambda i, j, k: (i, k),
                                    pipeline_mode=pl.Buffered(3))
    else:
        patches_spec = pl.BlockSpec((tm, tk), lambda i, j, k: (i, k))

    return pl.pallas_call(
        _gemm_bias_kernel,
        out_shape=jax.ShapeDtypeStruct((Mp, Np), out_dtype),
        grid_spec=pltpu.PrefetchScalarGridSpec(
            num_scalar_prefetch=0,
            grid=grid,
            in_specs=[
                patches_spec,                                     # patches
                pl.BlockSpec((tk, tn), lambda i, j, k: (k, j)),   # weights
                pl.BlockSpec((1, tn), lambda i, j, k: (0, j)),    # bias
            ],
            out_specs=pl.BlockSpec((tm, tn), lambda i, j, k: (i, j)),
            scratch_shapes=[pltpu.VMEM((tm, tn), jnp.float32)],
        ),
        compiler_params=pltpu.CompilerParams(
            dimension_semantics=("parallel", "parallel", "arbitrary"),
            # Allow XLA to fuse the im2col / bf16-cast / pad producer into the
            # kernel's patch DMAs (avoids materializing patches in HBM).
            allow_input_fusion=[True, False, False],
            vmem_limit_bytes=32 * 1024 * 1024,
        ),
    )(patches, w2, b2)


@functools.partial(jax.jit, static_argnames=("padding",))
def downsample(x_nchw, weight, bias, padding=1):
    """Forward of nn.Conv2d(C, Cout, 3, stride=2, padding=padding)(x)."""
    N, C, H, W = x_nchw.shape
    Cout = weight.shape[0]

    Hp, Wp = H + 2 * padding, W + 2 * padding
    Ho = (Hp - 3) // 2 + 1
    Wo = (Wp - 3) // 2 + 1

    # ---- wrapper glue: NCHW -> NHWC, pad, im2col (strided gathers) ----
    # TODO(synk): if the surrounding model can stay NHWC, drop both transposes
    # (each one is a full extra HBM read+write performed outside the kernel).
    x = jnp.transpose(x_nchw, (0, 2, 3, 1))          # NHWC
    x = jnp.pad(
        x,
        ((0, 0),
         (padding, 2 * Ho + 2 - H - padding),
         (padding, 2 * Wo + 2 - W - padding),
         (0, 0)),
    )
    # tap(kh, kw)[n, ho, wo, c] == x_pad[n, 2*ho + kh, 2*wo + kw, c]
    taps = [x[:, kh:kh + 2 * Ho:2, kw:kw + 2 * Wo:2, :]
            for kh in range(3) for kw in range(3)]
    patches = jnp.concatenate(taps, axis=-1)          # (N, Ho, Wo, 9*C)
    M, K = N * Ho * Wo, 9 * C
    patches = patches.reshape(M, K)

    # weight (Cout, Cin, 3, 3) -> (9*Cin, Cout); feature idx = (kh*3+kw)*Cin+c
    w2 = jnp.transpose(weight, (2, 3, 1, 0)).reshape(K, Cout)
    b2 = bias.astype(jnp.float32).reshape(1, Cout)

    # ---- bf16 MXU operands; f32 accumulation + f32 bias inside the kernel ----
    patches = patches.astype(jnp.bfloat16)
    w2 = w2.astype(jnp.bfloat16)

    # ---- tile selection ----
    # K/N: pad to a multiple of 128, then pick the largest 128-multiple tile
    # (<= 512) that divides the padded dim -> no wasted zero-pad MXU passes,
    # and for Cout <= 512 a single N tile so patches stream from HBM once.
    Kp = _round_up(K, 128)
    tk = 128 * _largest_divisor_leq(Kp // 128, 4)        # tk <= 512, tk | Kp
    Np = _round_up(Cout, 128)
    tn = 128 * _largest_divisor_leq(Np // 128, 4)        # tn <= 512, tn | Np
    # M: up to 512 rows per tile (multiple of 16 for bf16 sublane packing).
    if M <= 512:
        Mp = _round_up(M, 16)
        tm = Mp
    else:
        tm = 512
        Mp = _round_up(M, tm)

    patches = jnp.pad(patches, ((0, Mp - M), (0, Kp - K)))
    w2 = jnp.pad(w2, ((0, Kp - K), (0, Np - Cout)))
    b2 = jnp.pad(b2, ((0, 0), (0, Np - Cout)))

    out = _gemm_bias(patches, w2, b2, x_nchw.dtype, tm, tn, tk)

    out = out[:M, :Cout].reshape(N, Ho, Wo, Cout)
    return jnp.transpose(out, (0, 3, 1, 2))           # NHWC -> NCHW


if __name__ == "__main__":
    # Small shapes consistent with the module: batch=2, channels=4, spatial=16.
    N, C, H, W = 2, 4, 16, 16
    Cout = C            # out_channels defaults to channels
    padding = 1

    key = jax.random.PRNGKey(0)
    kx, kw_, kb = jax.random.split(key, 3)

    x = jax.random.normal(kx, (N, C, H, W), dtype=jnp.float32)
    # Deterministic init mimicking Conv2d's uniform(-bound, bound) scale.
    fan_in = C * 3 * 3
    bound = 1.0 / np.sqrt(fan_in)
    weight = jax.random.uniform(kw_, (Cout, C, 3, 3), jnp.float32, -bound, bound)
    bias = jax.random.uniform(kb, (Cout,), jnp.float32, -bound, bound)

    out = downsample(x, weight, bias, padding=padding)
    out = jax.block_until_ready(out)
    assert out.shape == (N, Cout, H // 2, W // 2), out.shape

    def conv_ref(xi, wi):
        return jax.lax.conv_general_dilated(
            xi, wi, window_strides=(2, 2),
            padding=((padding, padding), (padding, padding)),
            dimension_numbers=("NCHW", "OIHW", "NCHW"),
        ) + bias[None, :, None, None]

    # Tight check against a reference using bf16-rounded operands (the kernel
    # computes bf16 x bf16 products with f32 accumulation).
    ref_bf16 = conv_ref(x.astype(jnp.bfloat16).astype(jnp.float32),
                        weight.astype(jnp.bfloat16).astype(jnp.float32))
    ref_bf16 = jax.block_until_ready(ref_bf16)
    assert np.allclose(np.asarray(out), np.asarray(ref_bf16),
                       rtol=1e-3, atol=1e-3)

    # Loose check against the full-f32 module reference (bf16 operand rounding).
    ref_f32 = jax.block_until_ready(conv_ref(x, weight))
    assert np.allclose(np.asarray(out), np.asarray(ref_f32),
                       rtol=3e-2, atol=3e-2)

    print("KERNEL_OK")
</pallas_src>

<mosaic_0001>
module attributes {stable_mosaic.version = 11 : i64} {
  func.func @_gemm_bias_kernel(%arg0: i32, %arg1: i32, %arg2: i32, %arg3: memref<128x128xbf16, #tpu.memory_space<vmem>>, %arg4: memref<128x128xbf16, #tpu.memory_space<vmem>>, %arg5: memref<1x128xf32, #tpu.memory_space<vmem>>, %arg6: memref<128x128xf32, #tpu.memory_space<vmem>>, %arg7: memref<128x128xf32, #tpu.memory_space<vmem>>) attributes {dimension_semantics = [#tpu.dimension_semantics<parallel>, #tpu.dimension_semantics<parallel>, #tpu.dimension_semantics<arbitrary>], iteration_bounds = array<i64: 1, 1, 1>, scalar_prefetch = 0 : i64, scratch_operands = 1 : i64, tpu.core_type = #tpu.core_type<tc>, window_params = [{transform_indices = @transform_0, window_bounds = array<i64: 128, 128>}, {transform_indices = @transform_1, window_bounds = array<i64: 128, 128>}, {transform_indices = @transform_2, window_bounds = array<i64: 1, 128>}, {transform_indices = @transform_3, window_bounds = array<i64: 128, 128>}]} {
    %c0_i32 = arith.constant 0 : i32
    %0 = arith.cmpi eq, %arg2, %c0_i32 : i32
    %1 = arith.extui %0 : i1 to i32
    %c0_i32_0 = arith.constant 0 : i32
    %2 = arith.cmpi ne, %1, %c0_i32_0 : i32
    scf.if %2 {
      %cst_10 = arith.constant 0.000000e+00 : f32
      %12 = vector.broadcast %cst_10 : f32 to vector<128x128xf32>
      %c0_11 = arith.constant 0 : index
      %c0_12 = arith.constant 0 : index
      %13 = vector.load %arg7[%c0_11, %c0_12] : memref<128x128xf32, #tpu.memory_space<vmem>>, vector<128x128xf32>
      tpu.vector_store %arg7[%c0_11, %c0_12], %12 {strides = array<i32>} : memref<128x128xf32, #tpu.memory_space<vmem>>, vector<128x128xf32>,
    } else {
    }
    %c0 = arith.constant 0 : index
    %c0_1 = arith.constant 0 : index
    %3 = vector.load %arg7[%c0, %c0_1] : memref<128x128xf32, #tpu.memory_space<vmem>>, vector<128x128xf32>
    %c0_2 = arith.constant 0 : index
    %c0_3 = arith.constant 0 : index
    %4 = vector.load %arg3[%c0_2, %c0_3] : memref<128x128xbf16, #tpu.memory_space<vmem>>, vector<128x128xbf16>
    %c0_4 = arith.constant 0 : index
    %c0_5 = arith.constant 0 : index
    %5 = vector.load %arg4[%c0_4, %c0_5] : memref<128x128xbf16, #tpu.memory_space<vmem>>, vector<128x128xbf16>
    %cst = arith.constant dense<0.000000e+00> : vector<128x128xf32>
    %6 = tpu.matmul %4, %5, %cst {dimension_numbers = #tpu.dot_dimension_numbers<[1], [0], [0], [1], [0, 0, 1, 1], [], []>} : vector<128x128xbf16>, vector<128x128xbf16>, vector<128x128xf32> -> vector<128x128xf32>
    %7 = arith.addf %3, %6 : vector<128x128xf32>
    %c0_6 = arith.constant 0 : index
    %c0_7 = arith.constant 0 : index
    %8 = vector.load %arg7[%c0_6, %c0_7] : memref<128x128xf32, #tpu.memory_space<vmem>>, vector<128x128xf32>
    tpu.vector_store %arg7[%c0_6, %c0_7], %7 {strides = array<i32>} : memref<128x128xf32, #tpu.memory_space<vmem>>, vector<128x128xf32>,
    %c0_i32_8 = arith.constant 0 : i32
    %9 = arith.cmpi eq, %arg2, %c0_i32_8 : i32
    %10 = arith.extui %9 : i1 to i32
    %c0_i32_9 = arith.constant 0 : i32
    %11 = arith.cmpi ne, %10, %c0_i32_9 : i32
    scf.if %11 {
      %c0_10 = arith.constant 0 : index
      %c0_11 = arith.constant 0 : index
      %12 = vector.load %arg7[%c0_10, %c0_11] : memref<128x128xf32, #tpu.memory_space<vmem>>, vector<128x128xf32>
      %c0_12 = arith.constant 0 : index
      %c0_13 = arith.constant 0 : index
      %13 = vector.load %arg5[%c0_12, %c0_13] : memref<1x128xf32, #tpu.memory_space<vmem>>, vector<1x128xf32>
      %14 = vector.broadcast %13 : vector<1x128xf32> to vector<128x128xf32>
      %15 = arith.addf %12, %14 : vector<128x128xf32>
      %c0_14 = arith.constant 0 : index
      %c0_15 = arith.constant 0 : index
      %16 = vector.load %arg6[%c0_14, %c0_15] : memref<128x128xf32, #tpu.memory_space<vmem>>, vector<128x128xf32>
      tpu.vector_store %arg6[%c0_14, %c0_15], %15 {strides = array<i32>} : memref<128x128xf32, #tpu.memory_space<vmem>>, vector<128x128xf32>,
    } else {
    }
    return
  }
  func.func @transform_0(%arg0: i32, %arg1: i32, %arg2: i32) -> (i32, i32) {
    %c0_i32 = arith.constant 0 : i32
    return %arg0, %arg2 : i32, i32
  }
  func.func @transform_1(%arg0: i32, %arg1: i32, %arg2: i32) -> (i32, i32) {
    %c0_i32 = arith.constant 0 : i32
    return %arg2, %arg1 : i32, i32
  }
  func.func @transform_2(%arg0: i32, %arg1: i32, %arg2: i32) -> (i32, i32) {
    %c0_i32 = arith.constant 0 : i32
    %c0_i32_0 = arith.constant 0 : i32
    return %c0_i32, %arg1 : i32, i32
  }
  func.func @transform_3(%arg0: i32, %arg1: i32, %arg2: i32) -> (i32, i32) {
    %c0_i32 = arith.constant 0 : i32
    return %arg0, %arg1 : i32, i32
  }
}

</mosaic_0001>

<bundles_post_ra>
// kernel: downsample.2
= control target key start
LH: loop header
LB: loop body
LE: loop exit
PB: predicated region body
PF: predicated region fallthrough
CT: control target
= control target key end

     0   :  { %s990_s0 = inlined_call_operand.vmem [shape: bf16[128,128], index: 0, kind: input, shape index: {}]   ;;  %s991_s1 = inlined_call_operand.vmem [shape: f32[1,128], index: 1, kind: input, shape index: {}]   ;;  %s992_s2 = inlined_call_operand.vmem [shape: bf16[128,36], index: 2, kind: input, shape index: {}]   ;;  %s993_s3 = inlined_call_operand.<no memory space> [shape: bf16[], index: 3, kind: input, shape index: {}]   ;;  %s994_s4 = inlined_call_operand.vmem [shape: f32[128,128], index: 4, kind: output, shape index: {}]  }
   0x1   :  { %v9_v0 = vstv %s993_s3 }
   0x2   :  { %v838_v1 = vunpack.i.l.bf16 %v9_v0 }
   0x3   :  { %v784_v2 = vld [vmem:[%s990_s0 + $0x38] sm:$0xff]  ;;  %v32_v3 = vlaneseq  ;;  %v783_v4 = vld [vmem:[%s990_s0 + $0x30] sm:$0xff]  ;;  %v29_v5 = vld [vmem:[%s992_s2] sm:$0xff]  }
   0x4   :  { %550 = vmatpush.bf16.msra.mxu0 %v784_v2  ;;  %785 = vmatpush.bf16.msra.mxu1 %v784_v2  ;;  %v30_v7 = vunpack.c.l.bf16 %v29_v5  ;;  %v52_v8 = vunpack.c.h.bf16 %v29_v5  ;;  %v693_v9 = vld [vmem:[%s992_s2 + $0x10] sm:$0xff]   ;;  %v697_v10 = vld [vmem:[%s992_s2 + $0x20] sm:$0xff]   ;;  %v782_v19 = vld [vmem:[%s990_s0 + $0x28] sm:$0xff] }
   0x5   :  { %v849_v6 = vand.u32 127, %v32_v3  ;;  %786 = vmatpush.bf16.msra.mxu2 %v784_v2  ;;  %787 = vmatpush.bf16.msra.mxu3 %v784_v2  ;;  %v701_v11 = vld [vmem:[%s992_s2 + $0x30] sm:$0xff]   ;;  %v121_v12 = vunpack.c.l.bf16 %v693_v9  ;;  %v144_v13 = vunpack.c.h.bf16 %v693_v9  ;;  %v213_v14 = vunpack.c.l.bf16 %v697_v10  ;;  %v691_v24 = vld [vmem:[%s992_s2 + $0x8] sm:$0xff]   ;;  %v695_v25 = vld [vmem:[%s992_s2 + $0x18] sm:$0xff]  }
   0x6   :  { %v236_v17 = vunpack.c.h.bf16 %v697_v10  ;;  %v305_v18 = vunpack.c.l.bf16 %v701_v11  ;;  %v699_v30 = vld [vmem:[%s992_s2 + $0x28] sm:$0xff]   ;;  %v328_v34 = vunpack.c.h.bf16 %v701_v11  ;;  %v703_v35 = vld [vmem:[%s992_s2 + $0x38] sm:$0xff]   ;;  %v75_v37 = vunpack.c.l.bf16 %v691_v24  ;;  %v781_v40 = vld [vmem:[%s990_s0 + $0x20] sm:$0xff] }
   0x7   :  { %vm35_vm0 = vcmp.lt.s32.totalorder %v849_v6, 36  ;;  %v98_v38 = vunpack.c.h.bf16 %v691_v24  ;;  %v167_v39 = vunpack.c.l.bf16 %v695_v25  ;;  %v190_v42 = vunpack.c.h.bf16 %v695_v25  ;;  %v780_v54 = vld [vmem:[%s990_s0 + $0x18] sm:$0xff]  ;;  %v779_v63 = vld [vmem:[%s990_s0 + $0x10] sm:$0xff]  ;;  %v777_v3 = vld [vmem:[%s990_s0] sm:$0xff] }
   0x8   :  { %v36_v15 = vsel %vm35_vm0, %v30_v7, %v838_v1  ;;  %v58_v16 = vsel %vm35_vm0, %v52_v8, %v838_v1  ;;  %551 = vmatpush.bf16.msra.mxu0 %v783_v4  ;;  %788 = vmatpush.bf16.msra.mxu1 %v783_v4  ;;  %v127_v22 = vsel %vm35_vm0, %v121_v12, %v838_v1  ;;  %v259_v43 = vunpack.c.l.bf16 %v699_v30  ;;  %v809_v12 = vld [vmem:[%s991_s1] ss:$0 sm:$0xff] }
   0x9   :  { %v37_v20 = vpack.c.bf16 0.0, %v36_v15  ;;  %v60_v21 = vpack.c.bf16 0.0, %v58_v16  ;;  %v150_v23 = vsel %vm35_vm0, %v144_v13, %v838_v1  ;;  %789 = vmatpush.bf16.msra.mxu2 %v783_v4  ;;  %790 = vmatpush.bf16.msra.mxu3 %v783_v4  ;;  %v129_v26 = vpack.c.bf16 0.0, %v127_v22 }
   0xa   :  { %v152_v27 = vpack.c.bf16 0.0, %v150_v23  ;;  %v219_v28 = vsel %vm35_vm0, %v213_v14, %v838_v1  ;;  %v242_v29 = vsel %vm35_vm0, %v236_v17, %v838_v1  ;;  %v311_v33 = vsel %vm35_vm0, %v305_v18, %v838_v1 }
   0xb   :  { %40 = vst [vmem:[#allocation8] sm:$0xf] %v37_v20  ;;  %v221_v31 = vpack.c.bf16 0.0, %v219_v28  ;;  %v244_v32 = vpack.c.bf16 0.0, %v242_v29  ;;  %v313_v36 = vpack.c.bf16 0.0, %v311_v33  ;;  %v334_v41 = vsel %vm35_vm0, %v328_v34, %v838_v1 }
   0xc   :  { %63 = vst [vmem:[#allocation8 + $0x4] sm:$0xf] %v60_v21  ;;  %552 = vmatpush.bf16.msra.mxu0 %v782_v19  ;;  %791 = vmatpush.bf16.msra.mxu1 %v782_v19  ;;  %v282_v44 = vunpack.c.h.bf16 %v699_v30  ;;  %v336_v45 = vpack.c.bf16 0.0, %v334_v41  ;;  %v81_v46 = vsel %vm35_vm0, %v75_v37, %v838_v1  ;;  %v104_v47 = vsel %vm35_vm0, %v98_v38, %v838_v1 }
   0xd   :  { %132 = vst [vmem:[#allocation8 + $0x10] sm:$0xf] %v129_v26  ;;  %792 = vmatpush.bf16.msra.mxu2 %v782_v19  ;;  %793 = vmatpush.bf16.msra.mxu3 %v782_v19  ;;  %v351_v48 = vunpack.c.l.bf16 %v703_v35  ;;  %v83_v49 = vpack.c.bf16 0.0, %v81_v46  ;;  %v173_v50 = vsel %vm35_vm0, %v167_v39, %v838_v1  ;;  %v196_v51 = vsel %vm35_vm0, %v190_v42, %v838_v1 }
   0xe   :  { %155 = vst [vmem:[#allocation8 + $0x14] sm:$0xf] %v152_v27  ;;  %v106_v52 = vpack.c.bf16 0.0, %v104_v47  ;;  %v265_v53 = vsel %vm35_vm0, %v259_v43, %v838_v1  ;;  %v175_v55 = vpack.c.bf16 0.0, %v173_v50  ;;  %v288_v56 = vsel %vm35_vm0, %v282_v44, %v838_v1 }
   0xf   :  { %224 = vst [vmem:[#allocation8 + $0x20] sm:$0xf] %v221_v31  ;;  %v374_v57 = vunpack.c.h.bf16 %v703_v35  ;;  %v198_v58 = vpack.c.bf16 0.0, %v196_v51  ;;  %v357_v59 = vsel %vm35_vm0, %v351_v48, %v838_v1  ;;  %v267_v60 = vpack.c.bf16 0.0, %v265_v53 }
  0x10   :  { %247 = vst [vmem:[#allocation8 + $0x24] sm:$0xf] %v244_v32  ;;  %553 = vmatpush.bf16.msra.mxu0 %v781_v40  ;;  %794 = vmatpush.bf16.msra.mxu1 %v781_v40  ;;  %v290_v62 = vpack.c.bf16 0.0, %v288_v56  ;;  %v359_v0 = vpack.c.bf16 0.0, %v357_v59 }
  0x11   :  { %316 = vst [vmem:[#allocation8 + $0x30] sm:$0xf] %v313_v36  ;;  %795 = vmatpush.bf16.msra.mxu2 %v781_v40  ;;  %796 = vmatpush.bf16.msra.mxu3 %v781_v40  ;;  %v380_v61 = vsel %vm35_vm0, %v374_v57, %v838_v1  ;;  %v778_v1 = vld [vmem:[%s990_s0 + $0x8] sm:$0xff] }
  0x12   :  { %339 = vst [vmem:[#allocation8 + $0x34] sm:$0xf] %v336_v45  ;;  %v382_v2 = vpack.c.bf16 0.0, %v380_v61 }
  0x13   :  { %86 = vst [vmem:[#allocation8 + $0x8] sm:$0xf] %v83_v49  ;;  %v769_v4 = vld [vmem:[#allocation8] sm:$0xff] }
  0x14   :  { %109 = vst [vmem:[#allocation8 + $0xc] sm:$0xf] %v106_v52  ;;  %554 = vmatpush.bf16.msra.mxu0 %v780_v54  ;;  %797 = vmatpush.bf16.msra.mxu1 %v780_v54 }
  0x15   :  { %178 = vst [vmem:[#allocation8 + $0x18] sm:$0xf] %v175_v55  ;;  %798 = vmatpush.bf16.msra.mxu2 %v780_v54  ;;  %799 = vmatpush.bf16.msra.mxu3 %v780_v54  ;;  %v771_v5 = vld [vmem:[#allocation8 + $0x10] sm:$0xff] }
  0x16   :  { %201 = vst [vmem:[#allocation8 + $0x1c] sm:$0xf] %v198_v58 }
  0x17   :  { %270 = vst [vmem:[#allocation8 + $0x28] sm:$0xf] %v267_v60  ;;  %v773_v6 = vld [vmem:[#allocation8 + $0x20] sm:$0xff] }
  0x18   :  { %293 = vst [vmem:[#allocation8 + $0x2c] sm:$0xf] %v290_v62  ;;  %555 = vmatpush.bf16.msra.mxu0 %v779_v63  ;;  %800 = vmatpush.bf16.msra.mxu1 %v779_v63 }
  0x19   :  { %362 = vst [vmem:[#allocation8 + $0x38] sm:$0xf] %v359_v0  ;;  %801 = vmatpush.bf16.msra.mxu2 %v779_v63  ;;  %802 = vmatpush.bf16.msra.mxu3 %v779_v63  ;;  %v775_v7 = vld [vmem:[#allocation8 + $0x30] sm:$0xff] }
  0x1a   :  { %385 = vst [vmem:[#allocation8 + $0x3c] sm:$0xf] %v382_v2 }
  0x1b   :  { %v770_v8 = vld [vmem:[#allocation8 + $0x8] sm:$0xff] }
  0x1c   :  { %556 = vmatpush.bf16.msra.mxu0 %v778_v1  ;;  %803 = vmatpush.bf16.msra.mxu1 %v778_v1 }
  0x1d   :  { %804 = vmatpush.bf16.msra.mxu2 %v778_v1  ;;  %805 = vmatpush.bf16.msra.mxu3 %v778_v1  ;;  %v772_v9 = vld [vmem:[#allocation8 + $0x18] sm:$0xff] }
  0x1f   :  { %v774_v10 = vld [vmem:[#allocation8 + $0x28] sm:$0xff] }
  0x20   :  { %557 = vmatpush.bf16.msra.mxu0 %v777_v3  ;;  %806 = vmatpush.bf16.msra.mxu1 %v777_v3 }
  0x21   :  { %807 = vmatpush.bf16.msra.mxu2 %v777_v3  ;;  %808 = vmatpush.bf16.msra.mxu3 %v777_v3  ;;  %v776_v11 = vld [vmem:[#allocation8 + $0x38] sm:$0xff] }
  0x23   :  { %558 = vmatmul.bf16.vlgmr.msra.gmra.mxu0 %v769_v4  ;;  %568 = vmatmul.bf16.vlgmr.msra.gmra.mxu1 %v771_v5 }
  0x24   :  { %578 = vmatmul.bf16.vlgmr.msra.gmra.mxu2 %v773_v6  ;;  %588 = vmatmul.bf16.vlgmr.msra.gmra.mxu3 %v775_v7 }
  0x33   :  { %563 = vmatmul.bf16.gmra.mxu0 %v770_v8  ;;  %573 = vmatmul.bf16.gmra.mxu1 %v772_v9 }
  0x34   :  { %583 = vmatmul.bf16.gmra.mxu2 %v774_v10  ;;  %593 = vmatmul.bf16.gmra.mxu3 %v776_v11 }
  0xa0   :  { %v559_v13 = vpop.f32.mrf.mxu0  ;;  %v569_v14 = vpop.f32.mrf.mxu1 }
  0xa1   :  { %v654_v15 = vadd.f32 %v809_v12, %v559_v13  ;;  %v658_v16 = vadd.f32 %v809_v12, %v569_v14 }
  0xa3   :  { %670 = vst [vmem:[%s994_s4] sm:$0xff] %v654_v15 }
  0xa4   :  { %674 = vst [vmem:[%s994_s4 + $0x20] sm:$0xff] %v658_v16 }
  0xa7   :  { %v579_v17 = vpop.f32.mrf.mxu2  ;;  %v589_v18 = vpop.f32.mrf.mxu3 }
  0xa8   :  { %v662_v19 = vadd.f32 %v809_v12, %v579_v17  ;;  %v666_v20 = vadd.f32 %v809_v12, %v589_v18  ;;  %v561_v21 = vpop.f32.mrf.mxu0  ;;  %v571_v22 = vpop.f32.mrf.mxu1 }
  0xa9   :  { %v655_v23 = vadd.f32 %v809_v12, %v561_v21  ;;  %v659_v24 = vadd.f32 %v809_v12, %v571_v22 }
  0xaa   :  { %678 = vst [vmem:[%s994_s4 + $0x40] sm:$0xff] %v662_v19 }
  0xab   :  { %682 = vst [vmem:[%s994_s4 + $0x60] sm:$0xff] %v666_v20 }
  0xac   :  { %671 = vst [vmem:[%s994_s4 + $0x8] sm:$0xff] %v655_v23 }
  0xad   :  { %675 = vst [vmem:[%s994_s4 + $0x28] sm:$0xff] %v659_v24 }
  0xaf   :  { %v581_v25 = vpop.f32.mrf.mxu2  ;;  %v591_v26 = vpop.f32.mrf.mxu3 }
  0xb0   :  { %v663_v27 = vadd.f32 %v809_v12, %v581_v25  ;;  %v667_v28 = vadd.f32 %v809_v12, %v591_v26  ;;  %v564_v29 = vpop.f32.mrf.mxu0  ;;  %v574_v30 = vpop.f32.mrf.mxu1 }
  0xb1   :  { %v656_v31 = vadd.f32 %v809_v12, %v564_v29  ;;  %v660_v32 = vadd.f32 %v809_v12, %v574_v30 }
  0xb2   :  { %679 = vst [vmem:[%s994_s4 + $0x48] sm:$0xff] %v663_v27 }
  0xb3   :  { %683 = vst [vmem:[%s994_s4 + $0x68] sm:$0xff] %v667_v28 }
  0xb4   :  { %672 = vst [vmem:[%s994_s4 + $0x10] sm:$0xff] %v656_v31 }
  0xb5   :  { %676 = vst [vmem:[%s994_s4 + $0x30] sm:$0xff] %v660_v32 }
  0xb7   :  { %v584_v33 = vpop.f32.mrf.mxu2  ;;  %v594_v34 = vpop.f32.mrf.mxu3 }
  0xb8   :  { %v664_v35 = vadd.f32 %v809_v12, %v584_v33  ;;  %v668_v36 = vadd.f32 %v809_v12, %v594_v34  ;;  %v566_v37 = vpop.f32.mrf.mxu0  ;;  %v576_v38 = vpop.f32.mrf.mxu1 }
  0xb9   :  { %v657_v39 = vadd.f32 %v809_v12, %v566_v37  ;;  %v661_v40 = vadd.f32 %v809_v12, %v576_v38 }
  0xba   :  { %680 = vst [vmem:[%s994_s4 + $0x50] sm:$0xff] %v664_v35 }
  0xbb   :  { %684 = vst [vmem:[%s994_s4 + $0x70] sm:$0xff] %v668_v36 }
  0xbc   :  { %673 = vst [vmem:[%s994_s4 + $0x18] sm:$0xff] %v657_v39 }
  0xbd   :  { %677 = vst [vmem:[%s994_s4 + $0x38] sm:$0xff] %v661_v40 }
  0xbf   :  { %v586_v41 = vpop.f32.mrf.mxu2  ;;  %v596_v42 = vpop.f32.mrf.mxu3 }
  0xc0   :  { %v665_v43 = vadd.f32 %v809_v12, %v586_v41  ;;  %v669_v44 = vadd.f32 %v809_v12, %v596_v42 }
  0xc2   :  { %681 = vst [vmem:[%s994_s4 + $0x58] sm:$0xff] %v665_v43 }
  0xc3   :  { %685 = vst [vmem:[%s994_s4 + $0x78] sm:$0xff] %v669_v44 }

</bundles_post_ra>
